<compile_context>
chip_gen: v7x
topology: tpu7x:2x2x1
jax: 0.10.0
libtpu: 0.0.40
codegen_flags: <defaults>
</compile_context>

<pallas_src>
import functools

import jax
import jax.numpy as jnp
from jax import lax
from jax.experimental import pallas as pl
from jax.experimental.pallas import tpu as pltpu


def _mhsa_kernel(x_ref, wq_ref, bq_ref, wk_ref, bk_ref, o_ref,
                 k_ref, acc_ref, *, num_heads: int, head_dim: int, q_tile: int):
    # Blocks:
    #   x_ref  : (1, N, C)  bf16   full sequence of the current batch element
    #   wq/wk  : (C, C)     bf16   grid-invariant projection weights
    #   bq/bk  : (1, C)     f32
    #   o_ref  : (1, TQ, C) out    current query tile
    #   k_ref  : (N, C)     bf16   scratch: k projection (doubles as v)
    #   acc_ref: (TQ, C)    f32    scratch: output-tile accumulator
    n = x_ref.shape[1]
    c = x_ref.shape[2]
    scale = float(c) ** -0.5          # reference quirk: full dim, not head_dim
    t = pl.program_id(1)

    # (Re)compute the key/value projection once per batch element.  The q-tile
    # grid axis is "arbitrary", so t runs 0..T-1 sequentially per batch and
    # the scratch stays valid across its query tiles.
    @pl.when(t == 0)
    def _():
        kf = jnp.dot(x_ref[0], wk_ref[...],
                     preferred_element_type=jnp.float32) + bk_ref[0]
        k_ref[...] = kf.astype(k_ref.dtype)   # v = self.k(x): reference quirk

    # Query rows of this tile.
    if q_tile == n:
        xq = x_ref[0]                                          # (TQ, C)
    else:
        row0 = pl.multiple_of(t * q_tile, q_tile)
        xq = x_ref[0, pl.ds(row0, q_tile), :]                  # (TQ, C)

    q = jnp.dot(xq, wq_ref[...], preferred_element_type=jnp.float32) + bq_ref[0]
    q = (q * scale).astype(jnp.bfloat16)   # fold scale into q; bf16 MXU operand
    k = k_ref[...]                         # (N, C) bf16; also used as v

    # TODO(synk): for large num_heads a head-batched dot_general (or a
    # fori_loop over a head grid axis) would bound live ranges better than
    # this unrolled loop; for typical small head counts it is adequate.
    for h in range(num_heads):
        lo = h * head_dim
        qh = q[:, lo:lo + head_dim]                            # (TQ, Dh) bf16
        kh = k[:, lo:lo + head_dim]                            # (N,  Dh) bf16
        # Scores: contract the feature axis of both operands -- no kh.T.
        s = lax.dot_general(qh, kh, (((1,), (1,)), ((), ())),
                            preferred_element_type=jnp.float32)  # (TQ, N) f32
        s = s - jnp.max(s, axis=-1, keepdims=True)
        p = jnp.exp(s)                                           # f32 softmax
        p = p * pl.reciprocal(jnp.sum(p, axis=-1, keepdims=True), approx=True)
        acc_ref[:, lo:lo + head_dim] = jnp.dot(
            p.astype(jnp.bfloat16), kh, preferred_element_type=jnp.float32)

    # One lane-dense store of the whole tile (no per-head masked output stores).
    o_ref[0] = acc_ref[...].astype(o_ref.dtype)


def _pick_q_tile(n: int) -> int:
    if n <= 512:
        return n
    for tq in (512, 256, 128, 64, 32, 16, 8):
        if n % tq == 0:
            return tq
    return n


def mhsa_pallas(x, wq, bq, wk, bk, *, num_heads: int, q_tile=None):
    B, N, C = x.shape
    assert C % num_heads == 0
    head_dim = C // num_heads
    tq = q_tile if q_tile is not None else _pick_q_tile(N)
    assert N % tq == 0
    num_q_tiles = N // tq
    out_dtype = x.dtype

    # bf16 operands for the MXU (f32 accumulation inside the kernel); this also
    # halves HBM->VMEM traffic and the (double-buffered) weight residency.
    xb = x.astype(jnp.bfloat16)
    wqb = wq.astype(jnp.bfloat16)
    wkb = wk.astype(jnp.bfloat16)
    bqf = bq.astype(jnp.float32)
    bkf = bk.astype(jnp.float32)

    # Scoped-VMEM budget sized to the working set (+headroom), clamped below
    # v7x's 64 MiB physical VMEM.
    est = (2 * N * C * 2                                   # x block (bf16), 2 bufs
           + 2 * 2 * C * C * 2                             # Wq, Wk (bf16), 2 bufs
           + 2 * 2 * C * 4                                 # biases (f32), 2 bufs
           + 2 * tq * C * jnp.dtype(out_dtype).itemsize    # output tile, 2 bufs
           + N * C * 2 + tq * C * 4                        # scratch: K (bf16), acc (f32)
           + 2 * tq * N * 4)                               # f32 score temporaries
    vmem_limit = int(min(56 * 2 ** 20, max(16 * 2 ** 20, 3 * est)))

    kernel = functools.partial(_mhsa_kernel, num_heads=num_heads,
                               head_dim=head_dim, q_tile=tq)

    return pl.pallas_call(
        kernel,
        out_shape=jax.ShapeDtypeStruct((B, N, C), out_dtype),
        grid_spec=pltpu.PrefetchScalarGridSpec(
            num_scalar_prefetch=0,
            grid=(B, num_q_tiles),
            in_specs=[
                pl.BlockSpec((1, N, C), lambda b, t: (b, 0, 0)),  # x (keys + q rows)
                pl.BlockSpec((C, C), lambda b, t: (0, 0)),        # Wq (grid-invariant)
                pl.BlockSpec((1, C), lambda b, t: (0, 0)),        # bq
                pl.BlockSpec((C, C), lambda b, t: (0, 0)),        # Wk
                pl.BlockSpec((1, C), lambda b, t: (0, 0)),        # bk
            ],
            out_specs=pl.BlockSpec((1, tq, C), lambda b, t: (b, t, 0)),
            scratch_shapes=[
                pltpu.VMEM((N, C), jnp.bfloat16),   # k (= v) projection, per batch
                pltpu.VMEM((tq, C), jnp.float32),   # output-tile accumulator
            ],
        ),
        compiler_params=pltpu.CompilerParams(
            # Batch axis -> megacore-parallel; the q-tile axis carries the K
            # scratch reuse, so it is "arbitrary" (sequential per batch elem).
            dimension_semantics=("parallel", "arbitrary"),
            vmem_limit_bytes=vmem_limit,
        ),
    )(xb, wqb, bqf, wkb, bkf)


def mhsa_reference(x, wq, bq, wk, bk, *, num_heads: int):
    """Plain-JAX (f32) transcription of the PyTorch forward, for validation."""
    B, N, C = x.shape
    q = x @ wq + bq
    k = x @ wk + bk
    v = k  # same quirk as the module: v = self.k(x)
    q = q.reshape(B, N, num_heads, -1).transpose(0, 2, 1, 3)
    k = k.reshape(B, N, num_heads, -1).transpose(0, 2, 1, 3)
    v = v.reshape(B, N, num_heads, -1).transpose(0, 2, 1, 3)
    attn = (q @ jnp.swapaxes(k, 2, 3)) * (C ** -0.5)
    attn = jax.nn.softmax(attn, axis=-1)
    out = (attn @ v).transpose(0, 2, 1, 3).reshape(B, N, C)
    return out


if __name__ == "__main__":
    # Small deterministic example consistent with the module: x is (B, N, C).
    B, N, C = 2, 8, 32
    num_heads = 4

    key = jax.random.PRNGKey(0)
    kx, kwq, kbq, kwk, kbk = jax.random.split(key, 5)

    x = jax.random.normal(kx, (B, N, C), dtype=jnp.float32)
    # Linear weights stored as (C_in, C_out): y = x @ W + b.
    wq = jax.random.normal(kwq, (C, C), dtype=jnp.float32) * (1.0 / C ** 0.5)
    bq = jax.random.normal(kbq, (1, C), dtype=jnp.float32) * 0.02
    wk = jax.random.normal(kwk, (C, C), dtype=jnp.float32) * (1.0 / C ** 0.5)
    bk = jax.random.normal(kbk, (1, C), dtype=jnp.float32) * 0.02
    # self.v exists in the module but the forward never uses it -> no v weights.

    out = mhsa_pallas(x, wq, bq, wk, bk, num_heads=num_heads)
    out = jax.block_until_ready(out)

    ref = mhsa_reference(x, wq, bq, wk, bk, num_heads=num_heads)
    assert out.shape == (B, N, C)
    # bf16 MXU operands + approx reciprocal -> loosened tolerance vs f32 ref.
    assert jnp.allclose(out, ref, atol=5e-2, rtol=5e-2), "mismatch vs reference"

    print("KERNEL_OK")
</pallas_src>

<mosaic_0001>
module attributes {stable_mosaic.version = 11 : i64} {
  func.func @_mhsa_kernel(%arg0: i32, %arg1: i32, %arg2: memref<1x8x32xbf16, #tpu.memory_space<vmem>>, %arg3: memref<32x32xbf16, #tpu.memory_space<vmem>>, %arg4: memref<1x32xf32, #tpu.memory_space<vmem>>, %arg5: memref<32x32xbf16, #tpu.memory_space<vmem>>, %arg6: memref<1x32xf32, #tpu.memory_space<vmem>>, %arg7: memref<1x8x32xf32, #tpu.memory_space<vmem>>, %arg8: memref<8x32xbf16, #tpu.memory_space<vmem>>, %arg9: memref<8x32xf32, #tpu.memory_space<vmem>>) attributes {dimension_semantics = [#tpu.dimension_semantics<parallel>, #tpu.dimension_semantics<arbitrary>], iteration_bounds = array<i64: 2, 1>, scalar_prefetch = 0 : i64, scratch_operands = 2 : i64, tpu.core_type = #tpu.core_type<tc>, window_params = [{transform_indices = @transform_0, window_bounds = array<i64: 1, 8, 32>}, {pipeline_mode = #tpu.pipeline_mode<synchronous>, transform_indices = @transform_1, window_bounds = array<i64: 32, 32>}, {pipeline_mode = #tpu.pipeline_mode<synchronous>, transform_indices = @transform_2, window_bounds = array<i64: 1, 32>}, {pipeline_mode = #tpu.pipeline_mode<synchronous>, transform_indices = @transform_3, window_bounds = array<i64: 32, 32>}, {pipeline_mode = #tpu.pipeline_mode<synchronous>, transform_indices = @transform_4, window_bounds = array<i64: 1, 32>}, {transform_indices = @transform_5, window_bounds = array<i64: 1, 8, 32>}]} {
    %c0_i32 = arith.constant 0 : i32
    %0 = arith.cmpi eq, %arg1, %c0_i32 : i32
    %1 = arith.extui %0 : i1 to i32
    %c0_i32_0 = arith.constant 0 : i32
    %2 = arith.cmpi ne, %1, %c0_i32_0 : i32
    scf.if %2 {
      %c0_36 = arith.constant 0 : index
      %c0_37 = arith.constant 0 : index
      %c0_38 = arith.constant 0 : index
      %84 = vector.load %arg2[%c0_36, %c0_37, %c0_38] : memref<1x8x32xbf16, #tpu.memory_space<vmem>>, vector<1x8x32xbf16>
      %85 = vector.shape_cast %84 : vector<1x8x32xbf16> to vector<8x32xbf16>
      %c0_39 = arith.constant 0 : index
      %c0_40 = arith.constant 0 : index
      %86 = vector.load %arg5[%c0_39, %c0_40] : memref<32x32xbf16, #tpu.memory_space<vmem>>, vector<32x32xbf16>
      %cst_41 = arith.constant dense<0.000000e+00> : vector<8x32xf32>
      %87 = tpu.matmul %85, %86, %cst_41 {dimension_numbers = #tpu.dot_dimension_numbers<[1], [0], [0], [1], [0, 0, 1, 1], [], []>} : vector<8x32xbf16>, vector<32x32xbf16>, vector<8x32xf32> -> vector<8x32xf32>
      %c0_42 = arith.constant 0 : index
      %c0_43 = arith.constant 0 : index
      %88 = vector.load %arg6[%c0_42, %c0_43] : memref<1x32xf32, #tpu.memory_space<vmem>>, vector<1x32xf32>
      %89 = vector.shape_cast %88 : vector<1x32xf32> to vector<32xf32>
      %90 = vector.shape_cast %89 : vector<32xf32> to vector<1x32xf32>
      %91 = vector.broadcast %90 : vector<1x32xf32> to vector<8x32xf32>
      %92 = arith.addf %87, %91 : vector<8x32xf32>
      %93 = arith.truncf %92 : vector<8x32xf32> to vector<8x32xbf16>
      %c0_44 = arith.constant 0 : index
      %c0_45 = arith.constant 0 : index
      %94 = vector.load %arg8[%c0_44, %c0_45] : memref<8x32xbf16, #tpu.memory_space<vmem>>, vector<8x32xbf16>
      tpu.vector_store %arg8[%c0_44, %c0_45], %93 {strides = array<i32>} : memref<8x32xbf16, #tpu.memory_space<vmem>>, vector<8x32xbf16>,
    } else {
    }
    %c0 = arith.constant 0 : index
    %c0_1 = arith.constant 0 : index
    %c0_2 = arith.constant 0 : index
    %3 = vector.load %arg2[%c0, %c0_1, %c0_2] : memref<1x8x32xbf16, #tpu.memory_space<vmem>>, vector<1x8x32xbf16>
    %4 = vector.shape_cast %3 : vector<1x8x32xbf16> to vector<8x32xbf16>
    %c0_3 = arith.constant 0 : index
    %c0_4 = arith.constant 0 : index
    %5 = vector.load %arg3[%c0_3, %c0_4] : memref<32x32xbf16, #tpu.memory_space<vmem>>, vector<32x32xbf16>
    %cst = arith.constant dense<0.000000e+00> : vector<8x32xf32>
    %6 = tpu.matmul %4, %5, %cst {dimension_numbers = #tpu.dot_dimension_numbers<[1], [0], [0], [1], [0, 0, 1, 1], [], []>} : vector<8x32xbf16>, vector<32x32xbf16>, vector<8x32xf32> -> vector<8x32xf32>
    %c0_5 = arith.constant 0 : index
    %c0_6 = arith.constant 0 : index
    %7 = vector.load %arg4[%c0_5, %c0_6] : memref<1x32xf32, #tpu.memory_space<vmem>>, vector<1x32xf32>
    %8 = vector.shape_cast %7 : vector<1x32xf32> to vector<32xf32>
    %9 = vector.shape_cast %8 : vector<32xf32> to vector<1x32xf32>
    %10 = vector.broadcast %9 : vector<1x32xf32> to vector<8x32xf32>
    %11 = arith.addf %6, %10 : vector<8x32xf32>
    %cst_7 = arith.constant 0.176776692 : f32
    %12 = vector.broadcast %cst_7 : f32 to vector<8x32xf32>
    %13 = arith.mulf %11, %12 : vector<8x32xf32>
    %14 = arith.truncf %13 : vector<8x32xf32> to vector<8x32xbf16>
    %c0_8 = arith.constant 0 : index
    %c0_9 = arith.constant 0 : index
    %15 = vector.load %arg8[%c0_8, %c0_9] : memref<8x32xbf16, #tpu.memory_space<vmem>>, vector<8x32xbf16>
    %16 = vector.extract_strided_slice %14 {offsets = [0, 0], sizes = [8, 8], strides = [1, 1]} : vector<8x32xbf16> to vector<8x8xbf16>
    %17 = vector.extract_strided_slice %15 {offsets = [0, 0], sizes = [8, 8], strides = [1, 1]} : vector<8x32xbf16> to vector<8x8xbf16>
    %cst_10 = arith.constant dense<0.000000e+00> : vector<8x8xf32>
    %18 = tpu.matmul %16, %17, %cst_10 {dimension_numbers = #tpu.dot_dimension_numbers<[1], [1], [0], [0], [0, 0, 1, 0], [], []>} : vector<8x8xbf16>, vector<8x8xbf16>, vector<8x8xf32> -> vector<8x8xf32>
    %cst_11 = arith.constant dense<0xFF800000> : vector<8xf32>
    %19 = vector.multi_reduction <maximumf>, %18, %cst_11 [1] : vector<8x8xf32> to vector<8xf32>
    %20 = vector.shape_cast %19 : vector<8xf32> to vector<8x1xf32>
    %21 = vector.broadcast %20 : vector<8x1xf32> to vector<8x8xf32>
    %22 = arith.subf %18, %21 : vector<8x8xf32>
    %23 = math.exp %22 : vector<8x8xf32>
    %cst_12 = arith.constant dense<0.000000e+00> : vector<8xf32>
    %24 = vector.multi_reduction <add>, %23, %cst_12 [1] : vector<8x8xf32> to vector<8xf32>
    %25 = vector.shape_cast %24 : vector<8xf32> to vector<8x1xf32>
    %26 = tpu.reciprocal %25 {approx = true} : vector<8x1xf32> -> vector<8x1xf32>
    %27 = vector.broadcast %26 : vector<8x1xf32> to vector<8x8xf32>
    %28 = arith.mulf %23, %27 : vector<8x8xf32>
    %29 = arith.truncf %28 : vector<8x8xf32> to vector<8x8xbf16>
    %cst_13 = arith.constant dense<0.000000e+00> : vector<8x8xf32>
    %30 = tpu.matmul %29, %17, %cst_13 {dimension_numbers = #tpu.dot_dimension_numbers<[1], [0], [0], [1], [0, 0, 1, 1], [], []>} : vector<8x8xbf16>, vector<8x8xbf16>, vector<8x8xf32> -> vector<8x8xf32>
    %c0_14 = arith.constant 0 : index
    %c0_15 = arith.constant 0 : index
    %31 = vector.load %arg9[%c0_14, %c0_15] : memref<8x32xf32, #tpu.memory_space<vmem>>, vector<8x8xf32>
    tpu.vector_store %arg9[%c0_14, %c0_15], %30 {strides = array<i32>} : memref<8x32xf32, #tpu.memory_space<vmem>>, vector<8x8xf32>,
    %32 = vector.extract_strided_slice %14 {offsets = [0, 8], sizes = [8, 8], strides = [1, 1]} : vector<8x32xbf16> to vector<8x8xbf16>
    %33 = vector.extract_strided_slice %15 {offsets = [0, 8], sizes = [8, 8], strides = [1, 1]} : vector<8x32xbf16> to vector<8x8xbf16>
    %cst_16 = arith.constant dense<0.000000e+00> : vector<8x8xf32>
    %34 = tpu.matmul %32, %33, %cst_16 {dimension_numbers = #tpu.dot_dimension_numbers<[1], [1], [0], [0], [0, 0, 1, 0], [], []>} : vector<8x8xbf16>, vector<8x8xbf16>, vector<8x8xf32> -> vector<8x8xf32>
    %cst_17 = arith.constant dense<0xFF800000> : vector<8xf32>
    %35 = vector.multi_reduction <maximumf>, %34, %cst_17 [1] : vector<8x8xf32> to vector<8xf32>
    %36 = vector.shape_cast %35 : vector<8xf32> to vector<8x1xf32>
    %37 = vector.broadcast %36 : vector<8x1xf32> to vector<8x8xf32>
    %38 = arith.subf %34, %37 : vector<8x8xf32>
    %39 = math.exp %38 : vector<8x8xf32>
    %cst_18 = arith.constant dense<0.000000e+00> : vector<8xf32>
    %40 = vector.multi_reduction <add>, %39, %cst_18 [1] : vector<8x8xf32> to vector<8xf32>
    %41 = vector.shape_cast %40 : vector<8xf32> to vector<8x1xf32>
    %42 = tpu.reciprocal %41 {approx = true} : vector<8x1xf32> -> vector<8x1xf32>
    %43 = vector.broadcast %42 : vector<8x1xf32> to vector<8x8xf32>
    %44 = arith.mulf %39, %43 : vector<8x8xf32>
    %45 = arith.truncf %44 : vector<8x8xf32> to vector<8x8xbf16>
    %cst_19 = arith.constant dense<0.000000e+00> : vector<8x8xf32>
    %46 = tpu.matmul %45, %33, %cst_19 {dimension_numbers = #tpu.dot_dimension_numbers<[1], [0], [0], [1], [0, 0, 1, 1], [], []>} : vector<8x8xbf16>, vector<8x8xbf16>, vector<8x8xf32> -> vector<8x8xf32>
    %c0_20 = arith.constant 0 : index
    %c8 = arith.constant 8 : index
    %47 = vector.load %arg9[%c0_20, %c8] : memref<8x32xf32, #tpu.memory_space<vmem>>, vector<8x8xf32>
    tpu.vector_store %arg9[%c0_20, %c8], %46 {strides = array<i32>} : memref<8x32xf32, #tpu.memory_space<vmem>>, vector<8x8xf32>,
    %48 = vector.extract_strided_slice %14 {offsets = [0, 16], sizes = [8, 8], strides = [1, 1]} : vector<8x32xbf16> to vector<8x8xbf16>
    %49 = vector.extract_strided_slice %15 {offsets = [0, 16], sizes = [8, 8], strides = [1, 1]} : vector<8x32xbf16> to vector<8x8xbf16>
    %cst_21 = arith.constant dense<0.000000e+00> : vector<8x8xf32>
    %50 = tpu.matmul %48, %49, %cst_21 {dimension_numbers = #tpu.dot_dimension_numbers<[1], [1], [0], [0], [0, 0, 1, 0], [], []>} : vector<8x8xbf16>, vector<8x8xbf16>, vector<8x8xf32> -> vector<8x8xf32>
    %cst_22 = arith.constant dense<0xFF800000> : vector<8xf32>
    %51 = vector.multi_reduction <maximumf>, %50, %cst_22 [1] : vector<8x8xf32> to vector<8xf32>
    %52 = vector.shape_cast %51 : vector<8xf32> to vector<8x1xf32>
    %53 = vector.broadcast %52 : vector<8x1xf32> to vector<8x8xf32>
    %54 = arith.subf %50, %53 : vector<8x8xf32>
    %55 = math.exp %54 : vector<8x8xf32>
    %cst_23 = arith.constant dense<0.000000e+00> : vector<8xf32>
    %56 = vector.multi_reduction <add>, %55, %cst_23 [1] : vector<8x8xf32> to vector<8xf32>
    %57 = vector.shape_cast %56 : vector<8xf32> to vector<8x1xf32>
    %58 = tpu.reciprocal %57 {approx = true} : vector<8x1xf32> -> vector<8x1xf32>
    %59 = vector.broadcast %58 : vector<8x1xf32> to vector<8x8xf32>
    %60 = arith.mulf %55, %59 : vector<8x8xf32>
    %61 = arith.truncf %60 : vector<8x8xf32> to vector<8x8xbf16>
    %cst_24 = arith.constant dense<0.000000e+00> : vector<8x8xf32>
    %62 = tpu.matmul %61, %49, %cst_24 {dimension_numbers = #tpu.dot_dimension_numbers<[1], [0], [0], [1], [0, 0, 1, 1], [], []>} : vector<8x8xbf16>, vector<8x8xbf16>, vector<8x8xf32> -> vector<8x8xf32>
    %c0_25 = arith.constant 0 : index
    %c16 = arith.constant 16 : index
    %63 = vector.load %arg9[%c0_25, %c16] : memref<8x32xf32, #tpu.memory_space<vmem>>, vector<8x8xf32>
    tpu.vector_store %arg9[%c0_25, %c16], %62 {strides = array<i32>} : memref<8x32xf32, #tpu.memory_space<vmem>>, vector<8x8xf32>,
    %64 = vector.extract_strided_slice %14 {offsets = [0, 24], sizes = [8, 8], strides = [1, 1]} : vector<8x32xbf16> to vector<8x8xbf16>
    %65 = vector.extract_strided_slice %15 {offsets = [0, 24], sizes = [8, 8], strides = [1, 1]} : vector<8x32xbf16> to vector<8x8xbf16>
    %cst_26 = arith.constant dense<0.000000e+00> : vector<8x8xf32>
    %66 = tpu.matmul %64, %65, %cst_26 {dimension_numbers = #tpu.dot_dimension_numbers<[1], [1], [0], [0], [0, 0, 1, 0], [], []>} : vector<8x8xbf16>, vector<8x8xbf16>, vector<8x8xf32> -> vector<8x8xf32>
    %cst_27 = arith.constant dense<0xFF800000> : vector<8xf32>
    %67 = vector.multi_reduction <maximumf>, %66, %cst_27 [1] : vector<8x8xf32> to vector<8xf32>
    %68 = vector.shape_cast %67 : vector<8xf32> to vector<8x1xf32>
    %69 = vector.broadcast %68 : vector<8x1xf32> to vector<8x8xf32>
    %70 = arith.subf %66, %69 : vector<8x8xf32>
    %71 = math.exp %70 : vector<8x8xf32>
    %cst_28 = arith.constant dense<0.000000e+00> : vector<8xf32>
    %72 = vector.multi_reduction <add>, %71, %cst_28 [1] : vector<8x8xf32> to vector<8xf32>
    %73 = vector.shape_cast %72 : vector<8xf32> to vector<8x1xf32>
    %74 = tpu.reciprocal %73 {approx = true} : vector<8x1xf32> -> vector<8x1xf32>
    %75 = vector.broadcast %74 : vector<8x1xf32> to vector<8x8xf32>
    %76 = arith.mulf %71, %75 : vector<8x8xf32>
    %77 = arith.truncf %76 : vector<8x8xf32> to vector<8x8xbf16>
    %cst_29 = arith.constant dense<0.000000e+00> : vector<8x8xf32>
    %78 = tpu.matmul %77, %65, %cst_29 {dimension_numbers = #tpu.dot_dimension_numbers<[1], [0], [0], [1], [0, 0, 1, 1], [], []>} : vector<8x8xbf16>, vector<8x8xbf16>, vector<8x8xf32> -> vector<8x8xf32>
    %c0_30 = arith.constant 0 : index
    %c24 = arith.constant 24 : index
    %79 = vector.load %arg9[%c0_30, %c24] : memref<8x32xf32, #tpu.memory_space<vmem>>, vector<8x8xf32>
    tpu.vector_store %arg9[%c0_30, %c24], %78 {strides = array<i32>} : memref<8x32xf32, #tpu.memory_space<vmem>>, vector<8x8xf32>,
    %c0_31 = arith.constant 0 : index
    %c0_32 = arith.constant 0 : index
    %80 = vector.load %arg9[%c0_31, %c0_32] : memref<8x32xf32, #tpu.memory_space<vmem>>, vector<8x32xf32>
    %c0_33 = arith.constant 0 : index
    %c0_34 = arith.constant 0 : index
    %c0_35 = arith.constant 0 : index
    %81 = vector.load %arg7[%c0_33, %c0_34, %c0_35] : memref<1x8x32xf32, #tpu.memory_space<vmem>>, vector<1x8x32xf32>
    %82 = vector.shape_cast %81 : vector<1x8x32xf32> to vector<8x32xf32>
    %83 = vector.shape_cast %80 : vector<8x32xf32> to vector<1x8x32xf32>
    tpu.vector_store %arg7[%c0_33, %c0_34, %c0_35], %83 {strides = array<i32>} : memref<1x8x32xf32, #tpu.memory_space<vmem>>, vector<1x8x32xf32>,
    return
  }
  func.func @transform_0(%arg0: i32, %arg1: i32) -> (i32, i32, i32) {
    %c0_i32 = arith.constant 0 : i32
    %c0_i32_0 = arith.constant 0 : i32
    %c0_i32_1 = arith.constant 0 : i32
    return %arg0, %c0_i32, %c0_i32_0 : i32, i32, i32
  }
  func.func @transform_1(%arg0: i32, %arg1: i32) -> (i32, i32) {
    %c0_i32 = arith.constant 0 : i32
    %c0_i32_0 = arith.constant 0 : i32
    %c0_i32_1 = arith.constant 0 : i32
    return %c0_i32, %c0_i32_0 : i32, i32
  }
  func.func @transform_2(%arg0: i32, %arg1: i32) -> (i32, i32) {
    %c0_i32 = arith.constant 0 : i32
    %c0_i32_0 = arith.constant 0 : i32
    %c0_i32_1 = arith.constant 0 : i32
    return %c0_i32, %c0_i32_0 : i32, i32
  }
  func.func @transform_3(%arg0: i32, %arg1: i32) -> (i32, i32) {
    %c0_i32 = arith.constant 0 : i32
    %c0_i32_0 = arith.constant 0 : i32
    %c0_i32_1 = arith.constant 0 : i32
    return %c0_i32, %c0_i32_0 : i32, i32
  }
  func.func @transform_4(%arg0: i32, %arg1: i32) -> (i32, i32) {
    %c0_i32 = arith.constant 0 : i32
    %c0_i32_0 = arith.constant 0 : i32
    %c0_i32_1 = arith.constant 0 : i32
    return %c0_i32, %c0_i32_0 : i32, i32
  }
  func.func @transform_5(%arg0: i32, %arg1: i32) -> (i32, i32, i32) {
    %c0_i32 = arith.constant 0 : i32
    %c0_i32_0 = arith.constant 0 : i32
    return %arg0, %arg1, %c0_i32 : i32, i32, i32
  }
}

</mosaic_0001>

<bundles_post_ra>
// kernel: tpu_custom_call.1
= control target key start
LH: loop header
LB: loop body
LE: loop exit
PB: predicated region body
PF: predicated region fallthrough
CT: control target
= control target key end

     0   :  { %10 = vsyncpa [#allocation5], 0  ;;  %s1775_s0 = inlined_call_operand.hbm [shape: bf16[2,8,32], index: 0, kind: input, shape index: {}]   ;;  %s1776_s1 = inlined_call_operand.hbm [shape: bf16[32,32], index: 1, kind: input, shape index: {}]   ;;  %s1777_s2 = inlined_call_operand.vmem [shape: f32[1,32], index: 2, kind: input, shape index: {}]   ;;  %s1778_s3 = inlined_call_operand.hbm [shape: bf16[32,32], index: 3, kind: input, shape index: {}]   ;;  %s1779_s4 = inlined_call_operand.vmem [shape: f32[1,32], index: 4, kind: input, shape index: {}]   ;;  %s1780_s5 = inlined_call_operand.hbm [shape: f32[2,8,32], index: 5, kind: output, shape index: {}]  }
   0x1   :  { %12 = vsyncpa [#allocation5 + $0x1], 0 }
   0x2   :  { %13 = vsyncpa [#allocation8], 0 }
   0x3   :  { %14 = vsyncpa [#allocation6], 0 }
   0x4   :  { %16 = vsyncpa [#allocation6 + $0x1], 0  ;;  %s1446_s18 = smov 0   ;;  %s1448_s19 = smov 0  }
   0x5   :  { %s1450_s20 = smov 0   ;;  %s1452_s21 = smov 0  }
   0x6   :  { %s1454_s22 = smov 0   ;;  %s1456_s23 = smov 0  }
   0x7 LB: > { %s994_s24 = sadd.s32 4294967295, %s1400_s23   ;;  %s995_s25 = sadd.s32 4294967294, %s1400_s23   ;;  %s1400_s23 = sphi %s1456_s23, %s22_s23   ;;  %s1396_s22 = sphi %s1454_s22, %s1802_s22   ;;  %s1392_s21 = sphi %s1452_s21, %s1801_s21   ;;  %s1388_s20 = sphi %s1450_s20, %s1800_s20   ;;  %s1384_s19 = sphi %s1448_s19, %s1799_s19   ;;  %s1380_s18 = sphi %s1446_s18, %s1798_s18  }
   0x8   : > { %p54_p0 = scmp.ne.s32.totalorder %s1384_s19, %s1380_s18  ;;  %p1480_p1 = scmp.eq.s32.totalorder %s994_s24, 0 }
   0x9   : > { %p1484_p2 = scmp.eq.s32.totalorder %s994_s24, 1  ;;  %p170_p3 = scmp.eq.s32.totalorder %s995_s25, 1 }
   0xa   : > { %s1785_s26 = scalar_select %p1480_p1, 1, 0 }
   0xb   : > { %p1490_p4 = por %p1480_p1, %p54_p0  ;;  %p996_p5 = scmp.ge.s32.totalorder %s1400_s23, 1 }
   0xc   : > { %p1495_p6 = por %p170_p3, %p54_p0  ;;  %p177_p7 = scmp.lt.s32.totalorder %s1400_s23, 3 }
   0xd   : > { %s1787_s28 = scalar_select %p1490_p4, 1, 0 }
   0xe   : > { %s1788_s29 = scalar_select %p1495_p6, 1, 0 }
   0xf   : > { %p1500_p8 = pnand %p996_p5, %p177_p7  ;;  %s1402_s6 = smov [#allocation7]  }
  0x10   : > { %s189_s7 = sshll.u32 %s1402_s6, 4  ;;  %s1403_s9 = smov [#allocation9]   ;;  %s1504_s7 = int_to_ptr.vmem [resolvable:$true] %s189_s7 }
  0x11   : > { %p1126_p9 = pneg %p1500_p8  ;;  %s205_s10 = sshll.u32 %s1403_s9, 4  ;;  %s1515_s10 = int_to_ptr.vmem [resolvable:$true] %s205_s10 }
  0x12   : > { %s1228_s13 = scalar_lea.hbm %s1776_s1, 256 }
  0x13   : > { %p1511_p11 = pnand %p1126_p9, %p1480_p1  ;;  %p1229_p12 = scmp.ne.s32.totalorder %s1776_s1, %s1228_s13 }
  0x14   : > { %p1235_p5 = scmp.lt.u32.totalorder %s1228_s13, %s1776_s1 }
  0x15   : > { %p1230_p13 = pneg %p1511_p11 }
  0x17   : > { %p1231_p0 = pnand %p1230_p13, %p1229_p12 }
  0x19   : > { %p1232_p3 = pneg %p1231_p0 }
  0x1b   : > { %p1237_p7 = pnand %p1235_p5, %p1232_p3 }
  0x1d   : > { %1240 = shalt.err (!%p1237_p7)
}
  0x1e   : > { %s1241_s24 = scalar_lea.vmem %s1504_s7, 256  ;;  %p1249_p1 = scmp.lt.s32.totalorder %s1504_s7, %s1504_s7 }
  0x1f   : > { %p1242_p9 = scmp.ne.s32.totalorder %s1504_s7, %s1241_s24  ;;  %p1250_p12 = scmp.lt.s32.totalorder %s1241_s24, %s1241_s24 }
  0x21   : > { %p1244_p10 = pnand %p1242_p9, %p1230_p13  ;;  %p1251_p0 = por %p1250_p12, %p1249_p1 }
  0x23   : > { %p1245_p6 = pneg %p1244_p10 }
  0x25   : > { %p1252_p4 = pnand %p1251_p0, %p1245_p6 }
  0x27   : > { %1255 = shalt.err (!%p1252_p4)
}
  0x28   : > { %s1404_s25 = smov 64   ;;  %s1405_s6 = smov 4  }
  0x29   : > { %1129 = dma.hbm_to_vmem [thread:$0]  (!%p1511_p11), %s1776_s1, 256, %s1504_s7, [#allocation8], %s1404_s25, %s1404_s25, %s1405_s6  }
  0x2a   : > { %s1256_s14 = scalar_lea.hbm %s1778_s3, 256 }
  0x2b   : > { %p1257_p1 = scmp.ne.s32.totalorder %s1778_s3, %s1256_s14  ;;  %p1263_p10 = scmp.lt.u32.totalorder %s1256_s14, %s1778_s3 }
  0x2d   : > { %p1259_p4 = pnand %p1257_p1, %p1230_p13 }
  0x2f   : > { %p1260_p6 = pneg %p1259_p4 }
  0x31   : > { %p1265_p3 = pnand %p1263_p10, %p1260_p6 }
  0x33   : > { %1268 = shalt.err (!%p1265_p3)
}
  0x34   : > { %s1269_s7 = scalar_lea.vmem %s1515_s10, 256  ;;  %p1277_p12 = scmp.lt.s32.totalorder %s1515_s10, %s1515_s10 }
  0x35   : > { %p1270_p5 = scmp.ne.s32.totalorder %s1515_s10, %s1269_s7  ;;  %p1278_p0 = scmp.lt.s32.totalorder %s1269_s7, %s1269_s7 }
  0x37   : > { %p1272_p7 = pnand %p1270_p5, %p1230_p13  ;;  %p1279_p1 = por %p1278_p0, %p1277_p12 }
  0x39   : > { %p1273_p9 = pneg %p1272_p7 }
  0x3b   : > { %p1280_p4 = pnand %p1279_p1, %p1273_p9 }
  0x3d   : > { %1283 = shalt.err (!%p1280_p4)
}
  0x3e   : > { %1132 = dma.hbm_to_vmem [thread:$0]  (!%p1511_p11), %s1778_s3, 256, %s1515_s10, [#allocation8], %s1404_s25, %s1404_s25, %s1405_s6  }
  0x3f   : > { %s34_s12 = sadd.s32 1, %s1396_s22  ;;  %s41_s13 = sadd.s32 1, %s1388_s20 }
  0x40   : > { %p36_p13 = scmp.ge.s32.totalorder %s34_s12, 2  ;;  %p48_p6 = scmp.ne.s32.totalorder %s1388_s20, %s1384_s19 }
  0x41   : > { %p49_p10 = scmp.eq.s32.totalorder %s1400_s23, 0  ;;  %p1143_p3 = scmp.lt.s32.totalorder %s1400_s23, 2 }
  0x42   : > { %s1804_s12 = smov (%p36_p13, %s34_s12), 0  ;;  %p1579_p7 = por %p1484_p2, %p48_p6 }
  0x43   : > { %p50_p5 = por %p49_p10, %p48_p6  ;;  %s38_s14 = ssub.s32 %s1396_s22, %s1804_s12 }
  0x44   : > { %s1791_s8 = scalar_select %p1579_p7, 1, 0 }
  0x45   : > { %s222_s15 = sand.u32 1, %s1388_s20   ;;  %p39_p9 = scmp.eq.s32.totalorder %s38_s14, 0 }
  0x46   : > { %s1000_s10 = sshll.u32 %s222_s15, 2  ;;  %s1001_s25 = sshll.u32 %s1396_s22, 6 }
  0x47   : > { %s1588_s6 = scalar_select %p39_p9, %s1388_s20, %s41_s13  }
  0x48   : > { %s1593_s24 = scalar_lea.hbm %s1775_s0, %s1001_s25  ;;  %s226_s27 = scalar_lea.vmem [#allocation4], %s1000_s10 }
  0x49   : > { %s233_s7 = sshll.u32 %s226_s27, 4  ;;  %p1597_p2 = pnand %p1143_p3, %p50_p5  ;;  %s1601_s7 = int_to_ptr.vmem [resolvable:$true] %s233_s7 }
  0x4a   : > { %s223_s11 = scalar_lea.sflag [#allocation5], %s222_s15  ;;  %s1284_s13 = scalar_lea.hbm %s1593_s24, 64 }
  0x4b   : > { %p1285_p11 = scmp.ne.s32.totalorder %s1593_s24, %s1284_s13  ;;  %p1286_p12 = pneg %p1597_p2 }
  0x4c   : > { %s1289_s25 = scalar_lea.hbm %s1775_s0, 128  ;;  %p1290_p4 = scmp.lt.u32.totalorder %s1593_s24, %s1775_s0 }
  0x4d   : > { %p1287_p0 = pnand %p1286_p12, %p1285_p11  ;;  %p1291_p13 = scmp.lt.u32.totalorder %s1289_s25, %s1284_s13 }
  0x4e   : > { %p1293_p10 = scmp.lt.u32.totalorder %s1284_s13, %s1593_s24 }
  0x4f   : > { %p1288_p1 = pneg %p1287_p0  ;;  %p1292_p6 = por %p1291_p13, %p1290_p4 }
  0x51   : > { %p1294_p3 = por %p1293_p10, %p1292_p6 }
  0x53   : > { %p1295_p5 = pnand %p1294_p3, %p1288_p1 }
  0x55   : > { %1298 = shalt.err (!%p1295_p5)
}
  0x56   : > { %s1299_s15 = scalar_lea.vmem %s1601_s7, 64  ;;  %s1406_s27 = smov [#allocation4]  }
  0x57   : > { %p1300_p9 = scmp.ne.s32.totalorder %s1601_s7, %s1299_s15  ;;  %s1304_s14 = sshll.u32 %s1406_s27, 4  ;;  %s1305_s14 = int_to_ptr.vmem [resolvable:$false] %s1304_s14 }
  0x58   : > { %s1306_s10 = scalar_lea.vmem %s1305_s14, 128  ;;  %p1307_p7 = scmp.lt.s32.totalorder %s1601_s7, %s1305_s14 }
  0x59   : > { %p1302_p11 = pnand %p1300_p9, %p1286_p12  ;;  %p1308_p4 = scmp.lt.s32.totalorder %s1306_s10, %s1299_s15 }
  0x5b   : > { %p1303_p0 = pneg %p1302_p11  ;;  %p1309_p13 = por %p1308_p4, %p1307_p7 }
  0x5d   : > { %p1310_p6 = pnand %p1309_p13, %p1303_p0 }
  0x5f   : > { %1313 = shalt.err (!%p1310_p6)
}
  0x60   : > { %1136 = dma.hbm_to_vmem [thread:$0]  (!%p1597_p2), %s1593_s24, 64, %s1601_s7, %s223_s11  }
  0x61   : > { %242 = sbr.rel (%p1500_p8) target bundleno = 1360 (0x550), region = 40  ;;  %s1631_s13 = sand.u32 (!%p1500_p8), 1, %s1384_s19  }
  0x62   : > { %s1003_s25 = sshll.u32 (!%p1500_p8), %s1631_s13, 2  ;;  %s245_s16 = scalar_lea.sflag (!%p1500_p8), [#allocation5], %s1631_s13 }
  0x63   : > { %s248_s17 = scalar_lea.vmem (!%p1500_p8), [#allocation4], %s1003_s25  ;;  %p1793_p7 = scmp.ne.s32.totalorder (!%p1500_p8), %s1787_s28, 0 }
  0x68   : > { %1367 = dma.done.wait (%p1793_p7), %s245_s16, 64  }
  0x69   : > { %1369 = vsyncadd (%p1793_p7), %s245_s16, 4294967232  ;;  %p1794_p12 = scmp.ne.s32.totalorder %s1785_s26, 0 }
  0x6b   : > { %1371 = dma.done.wait (%p1794_p12), [#allocation8], 512  }
  0x6c   : > { %1373 = vsyncadd (%p1794_p12), [#allocation8], 4294966784  ;;  %v1407_v0 = vmov 0.0   ;;  %vm1408_vm0 = vmmov 0   ;;  %v1207_v1 = vld [vmem:[#allocation9] sm:$0xff]   ;;  %v1208_v2 = vld [vmem:[#allocation9 + $0x8] sm:$0xff]  }
  0x6d   : > { %1050 = vmatprep.subr.bf16.mxu0 %v1407_v0  ;;  %1054 = vmatprep.mubr.msk.bf16.mxu0 %vm1408_vm0, %v1407_v0  ;;  %v1209_v3 = vld [vmem:[#allocation7] sm:$0xff]   ;;  %v1210_v4 = vld [vmem:[#allocation7 + $0x8] sm:$0xff]   ;;  %v288_v5 = vld [vmem:[%s248_s17] sm:$0xf]  ;;  %vm312_vm1 = vcmask 261120   ;;  %vm357_vm2 = vcmask 257024  }
  0x6e   : > { %1058 = vmatprep.subr.bf16.mxu1 %v1407_v0  ;;  %1062 = vmatprep.mubr.msk.bf16.mxu1 %vm1408_vm0, %v1407_v0  ;;  %v359_v6 = vld [vmem:[%s248_s17] sm:$0xf]  ;;  %v1007_v7 = vld [vmem:[%s1779_s4] ss:$0 sm:$0xff]  ;;  %vm430_vm3 = vcmask 64512   ;;  %vm492_vm4 = vcmask 1043456  }
  0x6f   : > { %1051 = vmatpush3.bf16.msra.mxu0 %v1207_v1  ;;  %1059 = vmatpush3.bf16.msra.mxu1 %v1209_v3  ;;  %v1011_v15 = vld [vmem:[%s1777_s2] ss:$0 sm:$0xff]  ;;  %s1409_s7 = smov 112   ;;  %s1410_s9 = smov 120   ;;  %vm651_vm5 = vcmask 130112   ;;  %vm764_vm6 = vcmask 195712  }
  0x70   : > { %1052 = vmatprep.subr.bf16.mxu0 %v1407_v0  ;;  %1060 = vmatprep.subr.bf16.mxu1 %v1407_v0  ;;  %s1411_s11 = smov 104   ;;  %s1412_s15 = smov 8   ;;  %vm877_vm7 = vcmask 261312  }
  0x71   : > { %s1413_s27 = smov 16   ;;  %s1414_s14 = smov 24  }
  0x72   : > { %s1006_s10 = sshll.u32 %s1631_s13, 3  ;;  %s1025_s25 = sshll.u32 %s1392_s21, 7 }
  0x73   : > { %1053 = vmatpush3.bf16.msra.mxu0 %v1208_v2  ;;  %1061 = vmatpush3.bf16.msra.mxu1 %v1210_v4  ;;  %s282_s16 = scalar_lea.vmem [#allocation10], %s1006_s10  ;;  %s1725_s30 = scalar_lea.hbm %s1780_s5, %s1025_s25 }
  0x74   : > { %1066 = vmatprep.subr.bf16.mxu0 %v1407_v0  ;;  %1072 = vmatprep.subr.bf16.mxu1 %v1407_v0  ;;  %s896_s17 = sshll.u32 %s282_s16, 4  ;;  %s882_s24 = scalar_lea.sflag [#allocation6], %s1631_s13  ;;  %s1727_s17 = int_to_ptr.vmem [resolvable:$true] %s896_s17 }
  0x75   : > { %p1795_p2 = scmp.ne.s32.totalorder %s1791_s8, 0  ;;  %s1415_s21 = smov [#allocation10]  }
  0x76   : > { %1055 = vmatmul.mubr.msk.bf16.vlgmr.msra.gmra.mrb[0].mxu0 %vm312_vm1, %v288_v5  ;;  %1063 = vmatmul.mubr.msk.bf16.vlgmr.msra.gmra.mrb[0].mxu1 %vm312_vm1, %v359_v6 }
  0x77   : > { %1068 = vmatprep.mubr.msk.bf16.mxu0 %vm1408_vm0, %v1407_v0  ;;  %1074 = vmatprep.mubr.msk.bf16.mxu1 %vm1408_vm0, %v1407_v0 }
 0x149   : > { %v350_v8 = vpop.f32.mrb[0].mxu0  ;;  %v421_v14 = vpop.f32.mrb[0].mxu1 }
 0x14a   : > { %v351_v9 = vadd.f32 %v1007_v7, %v350_v8  ;;  %v1056_v10 = vpop.f32.mrb[1].mxu0  ;;  %v1064_v16 = vpop.f32.mrb[1].mxu1  ;;  %v422_v19 = vadd.f32 %v1011_v15, %v421_v14 }
 0x14b   : > { %v353_v11 = vpop.f32.mrb[2].mxu0  ;;  %v424_v17 = vpop.f32.mrb[2].mxu1 }
 0x14c   : > { %v356_v12 = vpack.c.bf16 %v351_v9, %v351_v9  ;;  %v1057_v13 = vpop.f32.mrb[3].mxu0  ;;  %v1065_v18 = vpop.f32.mrb[3].mxu1  ;;  %v427_v20 = vmul.f32 0.17677669, %v422_v19 }
 0x14e   : > { %358 = vst.msk [vmem:[#allocation2] sm:$0xf] %vm357_vm2, %v356_v12  ;;  %v428_v25 = vpack.c.bf16 %v427_v20, %v427_v20 }
 0x155   : > { %v429_v21 = vld [vmem:[#allocation2] sm:$0xf] }
 0x156   : > { %v435_v22 = vsel %vm430_vm3, %v429_v21, 0  ;;  %v493_v23 = vsel %vm492_vm4, %v429_v21, 0  ;;  %v1017_v24 = vcombine.low %v429_v21, %v429_v21 }
 0x157   : > { %1067 = vmatpush3.bf16.xpose.msra.mxu0 %v435_v22  ;;  %1073 = vmatpush3.bf16.msra.mxu1 %v493_v23 }
 0x158   : > { %655 = vrot.lane.b32.xlu1 %v1017_v24, %s1409_s7  ;;  %542 = vrot.lane.b32.xlu0 %v1017_v24, %s1410_s9 }
 0x159   : > { %1078 = vmatprep.subr.bf16.mxu0 %v1407_v0  ;;  %1084 = vmatprep.subr.bf16.mxu1 %v1407_v0 }
 0x15c   : > { %537 = vrot.lane.b32.xlu0 %v428_v25, %s1410_s9  ;;  %653 = vrot.lane.b32.xlu1 %v428_v25, %s1409_s7  ;;  %s1314_s7 = scalar_lea.vmem %s1727_s17, 128  ;;  %s1318_s9 = sshll.u32 %s1415_s21, 4  ;;  %s1319_s9 = int_to_ptr.vmem [resolvable:$false] %s1318_s9 }
 0x15d   : > { %p1315_p8 = scmp.ne.s32.totalorder %s1727_s17, %s1314_s7  ;;  %p1321_p3 = scmp.lt.s32.totalorder %s1727_s17, %s1319_s9 }
 0x15e   : > { %1069 = vmatmul.mubr.msk.bf16.vlgmr.msra.gmra.mrb[4].mxu0 %vm430_vm3, %v428_v25 }
 0x15f   : > { %1080 = vmatprep.mubr.msk.bf16.mxu0 %vm1408_vm0, %v1407_v0  ;;  %p1316_p1 = pnand %p1315_p8, %p1795_p2 }
 0x160   : > { %768 = vrot.lane.b32.xlu0 %v1017_v24, %s1411_s11  ;;  %766 = vrot.lane.b32.xlu1 %v428_v25, %s1411_s11  ;;  %s1320_s11 = scalar_lea.vmem %s1319_s9, 256 }
 0x161   : > { %p1317_p10 = pneg %p1316_p1  ;;  %p1322_p5 = scmp.lt.s32.totalorder %s1320_s11, %s1314_s7 }
 0x163   : > { %p1323_p9 = por %p1322_p5, %p1321_p3 }
 0x165   : > { %p1324_p11 = pnand %p1323_p9, %p1317_p10 }
 0x1ca   : > { %v1672_v26 = vpop.permute.xlu0 %542  ;;  %v1677_v28 = vpop.permute.xlu1 %655 }
 0x1cb   : > { %v548_v27 = vsel %vm430_vm3, %v1672_v26, 0  ;;  %v661_v30 = vsel %vm430_vm3, %v1677_v28, 0  ;;  %v605_v16 = vsel %vm492_vm4, %v1672_v26, 0  ;;  %v718_v22 = vsel %vm492_vm4, %v1677_v28, 0 }
 0x1cc   : > { %1079 = vmatpush3.bf16.xpose.msra.mxu0 %v548_v27 }
 0x1cd   : > { %1090 = vmatprep.subr.bf16.mxu0 %v1407_v0 }
 0x1ce   : > { %v538_v29 = vpop.permute.xlu0 %537  ;;  %v654_v32 = vpop.permute.xlu1 %653 }
 0x1d2   : > { %v1685_v31 = vpop.permute.xlu0 %768  ;;  %v767_v34 = vpop.permute.xlu1 %766 }
 0x1d3   : > { %1081 = vmatmul.mubr.msk.bf16.vlgmr.msra.gmra.mrb[8].mxu0 %vm430_vm3, %v538_v29  ;;  %v774_v33 = vsel %vm430_vm3, %v1685_v31, 0  ;;  %v831_v27 = vsel %vm492_vm4, %v1685_v31, 0 }
 0x1d4   : > { %1091 = vmatpush3.bf16.xpose.msra.mxu0 %v661_v30  ;;  %1092 = vmatprep.mubr.msk.bf16.mxu0 %vm1408_vm0, %v1407_v0 }
 0x1d5   : > { %1102 = vmatprep.subr.bf16.mxu0 %v1407_v0 }
 0x1db   : > { %1093 = vmatmul.mubr.msk.bf16.vlgmr.msra.gmra.mrb[12].mxu0 %vm430_vm3, %v654_v32 }
 0x1dc   : > { %1103 = vmatpush3.bf16.xpose.msra.mxu0 %v774_v33  ;;  %1104 = vmatprep.mubr.msk.bf16.mxu0 %vm1408_vm0, %v1407_v0 }
 0x1e3   : > { %1105 = vmatmul.mubr.msk.bf16.vlgmr.msra.gmra.mrb[16].mxu0 %vm430_vm3, %v767_v34 }
 0x231   : > { %v471_v35 = vpop.f32.mrb[4].mxu0 }
 0x232   : > { %v1070_v36 = vpop.f32.mrb[5].mxu0  ;;  %v477_v37 = vsel %vm430_vm3, %v471_v35, -inf }
 0x233   : > { %478 = vmax.xlane.f32.xlu0 %v477_v37  ;;  %v474_v38 = vpop.f32.mrb[6].mxu0 }
 0x234   : > { %v1071_v39 = vpop.f32.mrb[7].mxu0 }
 0x2a6   : > { %v584_v40 = vpop.f32.mrb[8].mxu0 }
 0x2a7   : > { %v1082_v41 = vpop.f32.mrb[9].mxu0  ;;  %v590_v42 = vsel %vm430_vm3, %v584_v40, -inf }
 0x2a8   : > { %591 = vmax.xlane.f32.xlu1 %v590_v42  ;;  %v587_v43 = vpop.f32.mrb[10].mxu0 }
 0x2a9   : > { %v1083_v44 = vpop.f32.mrb[11].mxu0 }
 0x2ae   : > { %v697_v45 = vpop.f32.mrb[12].mxu0 }
 0x2af   : > { %v1094_v46 = vpop.f32.mrb[13].mxu0  ;;  %v703_v47 = vsel %vm430_vm3, %v697_v45, -inf }
 0x2b0   : > { %704 = vmax.xlane.f32.xlu0 %v703_v47  ;;  %v700_v48 = vpop.f32.mrb[14].mxu0 }
 0x2b1   : > { %v1095_v49 = vpop.f32.mrb[15].mxu0 }
 0x2b6   : > { %v810_v50 = vpop.f32.mrb[16].mxu0 }
 0x2b7   : > { %v1106_v51 = vpop.f32.mrb[17].mxu0  ;;  %v816_v52 = vsel %vm430_vm3, %v810_v50, -inf }
 0x2b8   : > { %817 = vmax.xlane.f32.xlu0 %v816_v52  ;;  %v813_v53 = vpop.f32.mrb[18].mxu0 }
 0x2b9   : > { %v1107_v54 = vpop.f32.mrb[19].mxu0 }
 0x2c0   : > { %v479_v55 = vpop.xlane.xlu0 %478 }
 0x2c1   : > { %v480_v56 = vsub.f32 %v471_v35, %v479_v55 }
 0x2c3   : > { %v481_v57 = vmul.f32 1.442695, %v480_v56 }
 0x2c5   : > { %1212 = vpow2.f32 %v481_v57 }
 0x2cf   : > { %v1213_v58 = vpop.eup %1212 }
 0x2d0   : > { %v483_v59 = vsel %vm430_vm3, %v1213_v58, 0.0 }
 0x2d1   : > { %484 = vadd.xlane.f32.xlu1 %v483_v59 }
 0x335   : > { %v592_v60 = vpop.xlane.xlu1 %591 }
 0x336   : > { %v593_v61 = vsub.f32 %v584_v40, %v592_v60 }
 0x338   : > { %v594_v62 = vmul.f32 1.442695, %v593_v61 }
 0x33a   : > { %1214 = vpow2.f32 %v594_v62 }
 0x33d   : > { %v705_v63 = vpop.xlane.xlu0 %704 }
 0x33e   : > { %v706_v1 = vsub.f32 %v697_v45, %v705_v63 }
 0x340   : > { %v707_v2 = vmul.f32 1.442695, %v706_v1 }
 0x342   : > { %1216 = vpow2.f32 %v707_v2 }
 0x344   : > { %v1215_v3 = vpop.eup %1214 }
 0x345   : > { %v818_v4 = vpop.xlane.xlu0 %817  ;;  %v596_v5 = vsel %vm430_vm3, %v1215_v3, 0.0 }
 0x346   : > { %v819_v6 = vsub.f32 %v810_v50, %v818_v4  ;;  %597 = vadd.xlane.f32.xlu0 %v596_v5 }
 0x348   : > { %v820_v7 = vmul.f32 1.442695, %v819_v6 }
 0x34a   : > { %1218 = vpow2.f32 %v820_v7 }
 0x34c   : > { %v1217_v8 = vpop.eup %1216 }
 0x34d   : > { %v709_v9 = vsel %vm430_vm3, %v1217_v8, 0.0 }
 0x34e   : > { %710 = vadd.xlane.f32.xlu1 %v709_v9 }
 0x354   : > { %v1219_v10 = vpop.eup %1218 }
 0x355   : > { %v822_v11 = vsel %vm430_vm3, %v1219_v10, 0.0 }
 0x356   : > { %823 = vadd.xlane.f32.xlu0 %v822_v11 }
 0x35e   : > { %v485_v12 = vpop.xlane.xlu1 %484 }
 0x35f   : > { %1220 = vrcp.f32 %v485_v12 }
 0x369   : > { %v1221_v13 = vpop.eup %1220 }
 0x36a   : > { %v487_v14 = vmul.f32 %v1221_v13, %v1213_v58 }
 0x36c   : > { %v488_v15 = vpack.c.bf16 %v487_v14, %v487_v14 }
 0x36e   : > { %1075 = vmatmul.mubr.msk.bf16.vlgmr.msra.gmra.mrb[4].mxu1 %vm430_vm3, %v488_v15 }
 0x36f   : > { %1085 = vmatpush3.bf16.msra.mxu1 %v605_v16  ;;  %1086 = vmatprep.mubr.msk.bf16.mxu1 %vm1408_vm0, %v1407_v0 }
 0x370   : > { %1096 = vmatprep.subr.bf16.mxu1 %v1407_v0 }
 0x3d3   : > { %v598_v17 = vpop.xlane.xlu0 %597 }
 0x3d4   : > { %1222 = vrcp.f32 %v598_v17 }
 0x3db   : > { %v711_v18 = vpop.xlane.xlu1 %710 }
 0x3dc   : > { %1224 = vrcp.f32 %v711_v18 }
 0x3de   : > { %v1223_v19 = vpop.eup %1222 }
 0x3df   : > { %v600_v20 = vmul.f32 %v1223_v19, %v1215_v3 }
 0x3e1   : > { %v601_v21 = vpack.c.bf16 %v600_v20, %v600_v20 }
 0x3e3   : > { %1087 = vmatmul.mubr.msk.bf16.vlgmr.msra.gmra.mrb[8].mxu1 %vm430_vm3, %v601_v21  ;;  %v824_v23 = vpop.xlane.xlu0 %823 }
 0x3e4   : > { %1097 = vmatpush3.bf16.msra.mxu1 %v718_v22  ;;  %1226 = vrcp.f32 %v824_v23  ;;  %1098 = vmatprep.mubr.msk.bf16.mxu1 %vm1408_vm0, %v1407_v0 }
 0x3e5   : > { %1108 = vmatprep.subr.bf16.mxu1 %v1407_v0 }
 0x3e6   : > { %v1225_v24 = vpop.eup %1224 }
 0x3e7   : > { %v713_v25 = vmul.f32 %v1225_v24, %v1217_v8 }
 0x3e9   : > { %v714_v26 = vpack.c.bf16 %v713_v25, %v713_v25 }
 0x3eb   : > { %1099 = vmatmul.mubr.msk.bf16.vlgmr.msra.gmra.mrb[12].mxu1 %vm430_vm3, %v714_v26 }
 0x3ec   : > { %1109 = vmatpush3.bf16.msra.mxu1 %v831_v27  ;;  %1110 = vmatprep.mubr.msk.bf16.mxu1 %vm1408_vm0, %v1407_v0 }
 0x3ee   : > { %v1227_v28 = vpop.eup %1226 }
 0x3ef   : > { %v826_v29 = vmul.f32 %v1227_v28, %v1219_v10 }
 0x3f1   : > { %v827_v30 = vpack.c.bf16 %v826_v29, %v826_v29 }
 0x3f3   : > { %1111 = vmatmul.mubr.msk.bf16.vlgmr.msra.gmra.mrb[16].mxu1 %vm430_vm3, %v827_v30 }
 0x441   : > { %v529_v32 = vpop.f32.mrb[4].mxu1 }
 0x442   : > { %535 = vst.msk [vmem:[#allocation3] sm:$0xff] %vm430_vm3, %v529_v32  ;;  %v1076_v33 = vpop.f32.mrb[5].mxu1 }
 0x443   : > { %v532_v34 = vpop.f32.mrb[6].mxu1 }
 0x444   : > { %v1077_v35 = vpop.f32.mrb[7].mxu1 }
 0x4b6   : > { %v641_v36 = vpop.f32.mrb[8].mxu1 }
 0x4b7   : > { %648 = vrot.lane.b32.xlu1 %v641_v36, %s1412_s15  ;;  %v1088_v31 = vpop.f32.mrb[9].mxu1 }
 0x4b8   : > { %v644_v37 = vpop.f32.mrb[10].mxu1 }
 0x4b9   : > { %v1089_v38 = vpop.f32.mrb[11].mxu1 }
 0x4be   : > { %v754_v39 = vpop.f32.mrb[12].mxu1 }
 0x4bf   : > { %761 = vrot.lane.b32.xlu0 %v754_v39, %s1413_s27  ;;  %v1100_v0 = vpop.f32.mrb[13].mxu1 }
 0x4c0   : > { %v757_v40 = vpop.f32.mrb[14].mxu1 }
 0x4c1   : > { %v1101_v41 = vpop.f32.mrb[15].mxu1 }
 0x4c6   : > { %v867_v42 = vpop.f32.mrb[16].mxu1 }
 0x4c7   : > { %874 = vrot.lane.b32.xlu1 %v867_v42, %s1414_s14  ;;  %v1112_v43 = vpop.f32.mrb[17].mxu1 }
 0x4c8   : > { %v870_v44 = vpop.f32.mrb[18].mxu1 }
 0x4c9   : > { %v1113_v45 = vpop.f32.mrb[19].mxu1 }
 0x529   : > { %v649_v46 = vpop.permute.xlu1 %648 }
 0x52a   : > { %652 = vst.msk [vmem:[#allocation3] sm:$0xff] %vm651_vm5, %v649_v46 }
 0x531   : > { %v762_v47 = vpop.permute.xlu0 %761 }
 0x532   : > { %765 = vst.msk [vmem:[#allocation3] sm:$0xff] %vm764_vm6, %v762_v47 }
 0x539   : > { %v875_v48 = vpop.permute.xlu1 %874 }
 0x53a   : > { %878 = vst.msk [vmem:[#allocation3] sm:$0xff] %vm877_vm7, %v875_v48 }
 0x541   : > { %v879_v49 = vld [vmem:[#allocation3] sm:$0xff] }
 0x542   : > { %880 = vst.msk [vmem:[%s282_s16] sm:$0xff] %vm312_vm1, %v879_v49 }
 0x543   : > { %1327 = shalt.err (!%p1324_p11)
}
 0x544   : > { %s1328_s13 = scalar_lea.hbm %s1725_s30, 128  ;;  %s1332_s14 = scalar_lea.hbm %s1780_s5, 256 }
 0x545   : > { %p1329_p0 = scmp.ne.s32.totalorder %s1725_s30, %s1328_s13  ;;  %p1333_p6 = scmp.lt.u32.totalorder %s1725_s30, %s1780_s5 }
 0x546   : > { %p1334_p7 = scmp.lt.u32.totalorder %s1332_s14, %s1328_s13  ;;  %p1336_p8 = scmp.lt.u32.totalorder %s1328_s13, %s1725_s30 }
 0x547   : > { %p1330_p4 = pnand %p1329_p0, %p1795_p2 }
 0x548   : > { %p1335_p12 = por %p1334_p7, %p1333_p6 }
 0x549   : > { %p1331_p13 = pneg %p1330_p4 }
 0x54a   : > { %p1337_p1 = por %p1336_p8, %p1335_p12 }
 0x54c   : > { %p1338_p10 = pnand %p1337_p1, %p1331_p13 }
 0x54e   : > { %1341 = shalt.err (!%p1338_p10)
}
 0x54f   : > { %1124 = dma.vmem_to_hbm [thread:$0]  (%p1795_p2), %s1727_s17, 128, %s1725_s30, %s882_s24  }
 0x550 PF: > { %s908_s16 = sand.u32 1, %s1380_s18   ;;  %p1796_p3 = scmp.ne.s32.totalorder %s1788_s29, 0 }
 0x551   : > { %p1797_p5 = scmp.ge.s32.totalorder %s1400_s23, 2  ;;  %s909_s26 = scalar_lea.sflag [#allocation6], %s908_s16 }
 0x553   : > { %p1138_p9 = pnand %p1797_p5, %p1796_p3 }
 0x555   : > { %1375 = dma.done.wait (!%p1138_p9), %s909_s26, 128  }
 0x556   : > { %1377 = vsyncadd (!%p1138_p9), %s909_s26, 4294967168  ;;  %s22_s23 = sadd.s32 1, %s1400_s23   ;;  %s1798_s18 = smov %s1384_s19 }
 0x557   : > { %p19_p11 = scmp.ge.s32.totalorder %s22_s23, 4   ;;  %s1799_s19 = smov %s1388_s20 }
 0x558   : > { %s1800_s20 = smov %s1588_s6  ;;  %s1801_s21 = smov %s1396_s22 }
 0x559   : > { %s1802_s22 = smov %s1804_s12  ;;  %21 = sbr.rel (!%p19_p11) target bundleno = 7 (0x7), region = 97 }
 0x560   :  { %914 = vsyncpa [#allocation5], 1 }
 0x561   :  { %916 = vsyncpa [#allocation5 + $0x1], 1 }
 0x562   :  { %917 = vsyncpa [#allocation8], 1 }
 0x563   :  { %918 = vsyncpa [#allocation6], 1 }
 0x564   :  { %920 = vsyncpa [#allocation6 + $0x1], 1 }

</bundles_post_ra>
